<compile_context>
chip_gen: v6e
topology: v6e:2x2x1
jax: 0.10.0
libtpu: 0.0.40
codegen_flags: <defaults>
</compile_context>

<pallas_src>
import functools

import jax
import jax.numpy as jnp
from jax import lax
from jax.experimental import pallas as pl
from jax.experimental.pallas import tpu as pltpu


def _round_up(v, m):
    return ((v + m - 1) // m) * m


def _adapter_lora_kernel(x_ref, gamma_ref, beta_ref, wb_ref, wa_ref, o_ref,
                         *, eps, inv_d, compute_dtype):
    # x_ref: (rt, Dp) row tile; weights are full, constant-index blocks:
    #   wb_ref: (down, Dp)  == lora_B.weight   (feature axis zero-padded)
    #   wa_ref: (Dp, down)  == scalar * lora_A.weight (feature axis zero-padded)
    x = x_ref[...].astype(jnp.float32)

    # LayerNorm statistics in one fused pass (sum + sum of squares), f32.
    # Padded feature lanes hold zeros, so dividing by the *true* D is exact.
    s = jnp.sum(x, axis=-1, keepdims=True)
    sq = jnp.sum(x * x, axis=-1, keepdims=True)
    mean = s * inv_d
    var = jnp.maximum(sq * inv_d - mean * mean, 0.0)
    rstd = lax.rsqrt(var + eps)
    xn = (x - mean) * rstd
    # gamma/beta are zero on padded lanes -> padded lanes of xn become 0.
    xn = xn * gamma_ref[...].astype(jnp.float32) + beta_ref[...].astype(jnp.float32)

    # Down projection: (rt, Dp) @ (down, Dp)^T -> (rt, down).
    # Native-dtype operands (bf16 if that's the model dtype), f32 accumulator.
    xn_c = xn.astype(compute_dtype)
    h = lax.dot_general(xn_c, wb_ref[...],
                        dimension_numbers=(((1,), (1,)), ((), ())),
                        preferred_element_type=jnp.float32)
    # dropout(p=0.0) is the identity.

    # Up projection: (rt, down) @ (Dp, down)^T -> (rt, Dp).
    # The adapter scalar is pre-folded into wa, so there is no epilogue multiply.
    out = lax.dot_general(h.astype(compute_dtype), wa_ref[...],
                          dimension_numbers=(((1,), (1,)), ((), ())),
                          preferred_element_type=jnp.float32)

    o_ref[...] = out.astype(o_ref.dtype)


def adapter_lora_forward(x, gamma, beta, w_b, w_a, *, eps=1e-5, scalar=1.0,
                         row_tile=256):
    """Fused Adapter_lora forward.

    x:     (B, N, D)   activations (f32 or bf16)
    gamma: (D,)        layernorm weight
    beta:  (D,)        layernorm bias
    w_b:   (down, D)   lora_B.weight (PyTorch layout, no transpose needed)
    w_a:   (D, down)   lora_A.weight (PyTorch layout, no transpose needed)
    """
    B, N, D = x.shape
    down = w_b.shape[0]
    M = B * N

    # Lane-dense feature axis: pad D up to a multiple of 128 (no-op for real
    # ViT widths such as 768/1024). Padded lanes are zeroed in gamma/beta and
    # in the weights, so the math over the true D features is unchanged.
    Dp = _round_up(D, 128)

    # Row tile: large tiles amortize the per-grid-step overhead; cap by the
    # number of rows and by the default ~32 MiB scoped VMEM budget so the same
    # code is safe on v5e/v6e (128 MiB physical) and v7x (64 MiB physical).
    rt = min(_round_up(row_tile, 8), _round_up(M, 8))
    xbytes = jnp.dtype(x.dtype).itemsize
    wbytes = jnp.dtype(w_b.dtype).itemsize

    def _vmem_est(t):
        return (2 * t * Dp * 2 * xbytes          # double-buffered x tile + out tile
                + 2 * 2 * down * Dp * wbytes     # both (small) weight blocks
                + 2 * 2 * Dp * 4                 # gamma / beta
                + (2 << 20))                     # slack for accumulators

    while rt > 8 and _vmem_est(rt) > (28 << 20):
        rt = max(8, ((rt // 2) // 8) * 8)
    # TODO(synk): for very large D, raise CompilerParams(vmem_limit_bytes=...)
    # instead of shrinking the tile (v6e has 128 MiB physical VMEM).

    M_pad = _round_up(M, rt)

    # Flatten rows; zero-pad rows / feature lanes as needed (no-ops when the
    # shapes are already aligned, which is the production ViT case).
    x2d = x.reshape(M, D)
    if M_pad != M or Dp != D:
        x2d = jnp.pad(x2d, ((0, M_pad - M), (0, Dp - D)))
    gamma2d = jnp.pad(gamma.reshape(1, D), ((0, 0), (0, Dp - D)))
    beta2d = jnp.pad(beta.reshape(1, D), ((0, 0), (0, Dp - D)))
    wb_p = jnp.pad(w_b, ((0, 0), (0, Dp - D)))                   # (down, Dp)
    wa_p = jnp.pad(w_a * jnp.asarray(scalar, w_a.dtype),         # fold scalar once
                   ((0, Dp - D), (0, 0)))                        # (Dp, down)

    kernel = functools.partial(
        _adapter_lora_kernel,
        eps=float(eps),
        inv_d=1.0 / float(D),
        compute_dtype=jnp.dtype(w_b.dtype))

    out2d = pl.pallas_call(
        kernel,
        out_shape=jax.ShapeDtypeStruct((M_pad, Dp), x.dtype),
        grid_spec=pltpu.PrefetchScalarGridSpec(
            num_scalar_prefetch=0,
            grid=(M_pad // rt,),
            in_specs=[
                pl.BlockSpec((rt, Dp), lambda i: (i, 0)),    # x row tile
                pl.BlockSpec((1, Dp), lambda i: (0, 0)),     # gamma (constant block)
                pl.BlockSpec((1, Dp), lambda i: (0, 0)),     # beta  (constant block)
                pl.BlockSpec((down, Dp), lambda i: (0, 0)),  # lora_B.weight
                pl.BlockSpec((Dp, down), lambda i: (0, 0)),  # scalar * lora_A.weight
            ],
            out_specs=pl.BlockSpec((rt, Dp), lambda i: (i, 0)),
        ),
        compiler_params=pltpu.CompilerParams(
            dimension_semantics=("parallel",)),
    )(x2d, gamma2d, beta2d, wb_p, wa_p)

    return out2d[:M, :D].reshape(B, N, D)


def adapter_lora_reference(x, gamma, beta, w_b, w_a, *, eps=1e-5, scalar=1.0):
    xf = x.astype(jnp.float32)
    mean = jnp.mean(xf, axis=-1, keepdims=True)
    var = jnp.mean((xf - mean) ** 2, axis=-1, keepdims=True)
    xn = (xf - mean) / jnp.sqrt(var + eps)
    xn = xn * gamma.astype(jnp.float32) + beta.astype(jnp.float32)
    h = xn @ w_b.astype(jnp.float32).T
    out = h @ w_a.astype(jnp.float32).T
    return (scalar * out).astype(x.dtype)


if __name__ == "__main__":
    # Small shapes consistent with the module: (batch, tokens, n_embd) and a
    # LoRA bottleneck. Real ViT would be D=768, down=config.ffn_num.
    B, N, D, DOWN = 2, 8, 32, 8
    scalar = 0.75          # adapter_scalar
    eps = 1e-5             # nn.LayerNorm default

    key = jax.random.PRNGKey(0)
    kx, kb, ka, kg, kbt = jax.random.split(key, 5)

    x = jax.random.normal(kx, (B, N, D), dtype=jnp.float32)
    gamma = 1.0 + 0.1 * jax.random.normal(kg, (D,), dtype=jnp.float32)
    beta = 0.1 * jax.random.normal(kbt, (D,), dtype=jnp.float32)
    # lora_B.weight: (down, D) (kaiming-uniform-like); lora_A.weight: (D, down).
    # Real init zeros lora_A; random here so the kernel math is exercised.
    w_b = jax.random.uniform(kb, (DOWN, D), jnp.float32, -0.5, 0.5)
    w_a = 0.1 * jax.random.normal(ka, (D, DOWN), dtype=jnp.float32)

    out = jax.block_until_ready(
        adapter_lora_forward(x, gamma, beta, w_b, w_a, eps=eps, scalar=scalar))
    ref = adapter_lora_reference(x, gamma, beta, w_b, w_a, eps=eps, scalar=scalar)
    assert out.shape == (B, N, D)
    assert jnp.allclose(out, ref, atol=1e-4, rtol=1e-4), (
        f"max abs err {float(jnp.max(jnp.abs(out - ref)))}")

    # Ragged row count (B*N = 14, not a multiple of 8) exercises the padding path.
    x2 = jax.random.normal(jax.random.PRNGKey(1), (2, 7, D), dtype=jnp.float32)
    out2 = jax.block_until_ready(
        adapter_lora_forward(x2, gamma, beta, w_b, w_a, eps=eps, scalar=scalar))
    ref2 = adapter_lora_reference(x2, gamma, beta, w_b, w_a, eps=eps, scalar=scalar)
    assert jnp.allclose(out2, ref2, atol=1e-4, rtol=1e-4), (
        f"max abs err {float(jnp.max(jnp.abs(out2 - ref2)))}")

    print("KERNEL_OK")
</pallas_src>

<mosaic_0001>
module attributes {stable_mosaic.version = 11 : i64} {
  func.func @_adapter_lora_kernel(%arg0: i32, %arg1: memref<16x128xf32, #tpu.memory_space<vmem>>, %arg2: memref<1x128xf32, #tpu.memory_space<vmem>>, %arg3: memref<1x128xf32, #tpu.memory_space<vmem>>, %arg4: memref<8x128xf32, #tpu.memory_space<vmem>>, %arg5: memref<128x8xf32, #tpu.memory_space<vmem>>, %arg6: memref<16x128xf32, #tpu.memory_space<vmem>>) attributes {dimension_semantics = [#tpu.dimension_semantics<parallel>], iteration_bounds = array<i64: 1>, scalar_prefetch = 0 : i64, scratch_operands = 0 : i64, tpu.core_type = #tpu.core_type<tc>, window_params = [{transform_indices = @transform_0, window_bounds = array<i64: 16, 128>}, {pipeline_mode = #tpu.pipeline_mode<synchronous>, transform_indices = @transform_1, window_bounds = array<i64: 1, 128>}, {pipeline_mode = #tpu.pipeline_mode<synchronous>, transform_indices = @transform_2, window_bounds = array<i64: 1, 128>}, {pipeline_mode = #tpu.pipeline_mode<synchronous>, transform_indices = @transform_3, window_bounds = array<i64: 8, 128>}, {pipeline_mode = #tpu.pipeline_mode<synchronous>, transform_indices = @transform_4, window_bounds = array<i64: 128, 8>}, {transform_indices = @transform_5, window_bounds = array<i64: 16, 128>}]} {
    %c0 = arith.constant 0 : index
    %c0_0 = arith.constant 0 : index
    %0 = vector.load %arg1[%c0, %c0_0] : memref<16x128xf32, #tpu.memory_space<vmem>>, vector<16x128xf32>
    %cst = arith.constant dense<0.000000e+00> : vector<16xf32>
    %1 = vector.multi_reduction <add>, %0, %cst [1] : vector<16x128xf32> to vector<16xf32>
    %2 = vector.shape_cast %1 : vector<16xf32> to vector<16x1xf32>
    %3 = arith.mulf %0, %0 : vector<16x128xf32>
    %cst_1 = arith.constant dense<0.000000e+00> : vector<16xf32>
    %4 = vector.multi_reduction <add>, %3, %cst_1 [1] : vector<16x128xf32> to vector<16xf32>
    %5 = vector.shape_cast %4 : vector<16xf32> to vector<16x1xf32>
    %cst_2 = arith.constant 3.125000e-02 : f32
    %6 = vector.broadcast %cst_2 : f32 to vector<16x1xf32>
    %7 = arith.mulf %2, %6 : vector<16x1xf32>
    %cst_3 = arith.constant 3.125000e-02 : f32
    %8 = vector.broadcast %cst_3 : f32 to vector<16x1xf32>
    %9 = arith.mulf %5, %8 : vector<16x1xf32>
    %10 = arith.mulf %7, %7 : vector<16x1xf32>
    %11 = arith.subf %9, %10 : vector<16x1xf32>
    %cst_4 = arith.constant 0.000000e+00 : f32
    %12 = vector.broadcast %cst_4 : f32 to vector<16x1xf32>
    %13 = arith.maximumf %11, %12 : vector<16x1xf32>
    %cst_5 = arith.constant 9.99999974E-6 : f32
    %14 = vector.broadcast %cst_5 : f32 to vector<16x1xf32>
    %15 = arith.addf %13, %14 : vector<16x1xf32>
    %16 = math.rsqrt %15 : vector<16x1xf32>
    %17 = vector.broadcast %7 : vector<16x1xf32> to vector<16x128xf32>
    %18 = arith.subf %0, %17 : vector<16x128xf32>
    %19 = vector.broadcast %16 : vector<16x1xf32> to vector<16x128xf32>
    %20 = arith.mulf %18, %19 : vector<16x128xf32>
    %c0_6 = arith.constant 0 : index
    %c0_7 = arith.constant 0 : index
    %21 = vector.load %arg2[%c0_6, %c0_7] : memref<1x128xf32, #tpu.memory_space<vmem>>, vector<1x128xf32>
    %22 = vector.broadcast %21 : vector<1x128xf32> to vector<16x128xf32>
    %23 = arith.mulf %20, %22 : vector<16x128xf32>
    %c0_8 = arith.constant 0 : index
    %c0_9 = arith.constant 0 : index
    %24 = vector.load %arg3[%c0_8, %c0_9] : memref<1x128xf32, #tpu.memory_space<vmem>>, vector<1x128xf32>
    %25 = vector.broadcast %24 : vector<1x128xf32> to vector<16x128xf32>
    %26 = arith.addf %23, %25 : vector<16x128xf32>
    %c0_10 = arith.constant 0 : index
    %c0_11 = arith.constant 0 : index
    %27 = vector.load %arg4[%c0_10, %c0_11] : memref<8x128xf32, #tpu.memory_space<vmem>>, vector<8x128xf32>
    %cst_12 = arith.constant dense<0.000000e+00> : vector<16x8xf32>
    %28 = tpu.matmul %26, %27, %cst_12 {dimension_numbers = #tpu.dot_dimension_numbers<[1], [1], [0], [0], [0, 0, 1, 0], [], []>} : vector<16x128xf32>, vector<8x128xf32>, vector<16x8xf32> -> vector<16x8xf32>
    %c0_13 = arith.constant 0 : index
    %c0_14 = arith.constant 0 : index
    %29 = vector.load %arg5[%c0_13, %c0_14] : memref<128x8xf32, #tpu.memory_space<vmem>>, vector<128x8xf32>
    %cst_15 = arith.constant dense<0.000000e+00> : vector<16x128xf32>
    %30 = tpu.matmul %28, %29, %cst_15 {dimension_numbers = #tpu.dot_dimension_numbers<[1], [1], [0], [0], [0, 0, 1, 0], [], []>} : vector<16x8xf32>, vector<128x8xf32>, vector<16x128xf32> -> vector<16x128xf32>
    %c0_16 = arith.constant 0 : index
    %c0_17 = arith.constant 0 : index
    %31 = vector.load %arg6[%c0_16, %c0_17] : memref<16x128xf32, #tpu.memory_space<vmem>>, vector<16x128xf32>
    tpu.vector_store %arg6[%c0_16, %c0_17], %30 {strides = array<i32>} : memref<16x128xf32, #tpu.memory_space<vmem>>, vector<16x128xf32>,
    return
  }
  func.func @transform_0(%arg0: i32) -> (i32, i32) {
    %c0_i32 = arith.constant 0 : i32
    %c0_i32_0 = arith.constant 0 : i32
    return %arg0, %c0_i32 : i32, i32
  }
  func.func @transform_1(%arg0: i32) -> (i32, i32) {
    %c0_i32 = arith.constant 0 : i32
    %c0_i32_0 = arith.constant 0 : i32
    %c0_i32_1 = arith.constant 0 : i32
    return %c0_i32, %c0_i32_0 : i32, i32
  }
  func.func @transform_2(%arg0: i32) -> (i32, i32) {
    %c0_i32 = arith.constant 0 : i32
    %c0_i32_0 = arith.constant 0 : i32
    %c0_i32_1 = arith.constant 0 : i32
    return %c0_i32, %c0_i32_0 : i32, i32
  }
  func.func @transform_3(%arg0: i32) -> (i32, i32) {
    %c0_i32 = arith.constant 0 : i32
    %c0_i32_0 = arith.constant 0 : i32
    %c0_i32_1 = arith.constant 0 : i32
    return %c0_i32, %c0_i32_0 : i32, i32
  }
  func.func @transform_4(%arg0: i32) -> (i32, i32) {
    %c0_i32 = arith.constant 0 : i32
    %c0_i32_0 = arith.constant 0 : i32
    %c0_i32_1 = arith.constant 0 : i32
    return %c0_i32, %c0_i32_0 : i32, i32
  }
  func.func @transform_5(%arg0: i32) -> (i32, i32) {
    %c0_i32 = arith.constant 0 : i32
    %c0_i32_0 = arith.constant 0 : i32
    return %arg0, %c0_i32 : i32, i32
  }
}

</mosaic_0001>

<bundles_post_ra>
// kernel: tpu_custom_call.1
= control target key start
LH: loop header
LB: loop body
LE: loop exit
PB: predicated region body
PF: predicated region fallthrough
CT: control target
= control target key end

     0   :  { %s564_s0 = inlined_call_operand.vmem [shape: f32[16,128], index: 0, kind: input, shape index: {}]   ;;  %s565_s1 = inlined_call_operand.vmem [shape: f32[1,128], index: 1, kind: input, shape index: {}]   ;;  %s566_s2 = inlined_call_operand.vmem [shape: f32[1,128], index: 2, kind: input, shape index: {}]   ;;  %s567_s3 = inlined_call_operand.vmem [shape: f32[8,128], index: 3, kind: input, shape index: {}]   ;;  %s568_s4 = inlined_call_operand.vmem [shape: f32[128,8], index: 4, kind: input, shape index: {}]   ;;  %s569_s5 = inlined_call_operand.hbm [shape: f32[16,128], index: 5, kind: output, shape index: {}]  }
   0x1   :  { %v455_v0 = vld [vmem:[%s564_s0] sm:$0xff]  ;;  %v460_v1 = vld [vmem:[%s564_s0 + $0x8] sm:$0xff] }
   0x2   :  { %10 = vsyncpa [#allocation3], 0  ;;  %23 = vadd.xlane.f32.xlu0 %v455_v0  ;;  %v27_v2 = vmul.f32 %v455_v0, %v455_v0  ;;  %v28_v3 = vmul.f32 %v460_v1, %v460_v1  ;;  %v69_v4 = vld [vmem:[%s567_s3] sm:$0xff]  ;;  %v160_v5 = vld [vmem:[%s568_s4 + $0x78] sm:$0xff]  ;;  %vm161_vm0 = vcmask 64512  }
   0x3   :  { %350 = vmatprep.subr.mxu0 %v69_v4  ;;  %v159_v6 = vld [vmem:[%s568_s4 + $0x70] sm:$0xff]  ;;  %355 = vmatprep.subr.msk.mxu1 %vm161_vm0, %v160_v5  ;;  %v158_v7 = vld [vmem:[%s568_s4 + $0x68] sm:$0xff]  ;;  %v157_v8 = vld [vmem:[%s568_s4 + $0x60] sm:$0xff] }
   0x4   :  { %29 = vadd.xlane.f32.xlu1 %v27_v2  ;;  %351 = vmatpush3.xpose.msra.mxu0 %v69_v4  ;;  %v156_v9 = vld [vmem:[%s568_s4 + $0x58] sm:$0xff]  ;;  %v155_v10 = vld [vmem:[%s568_s4 + $0x50] sm:$0xff]  ;;  %v154_v11 = vld [vmem:[%s568_s4 + $0x48] sm:$0xff] }
   0x5   :  { %356 = vmatpush3.xpose.msk.msra.mxu1 %vm161_vm0, %v160_v5  ;;  %v153_v12 = vld [vmem:[%s568_s4 + $0x40] sm:$0xff]  ;;  %v152_v13 = vld [vmem:[%s568_s4 + $0x38] sm:$0xff]  ;;  %v151_v14 = vld [vmem:[%s568_s4 + $0x30] sm:$0xff] }
   0x6   :  { %25 = vadd.xlane.f32.xlu0 %v460_v1  ;;  %357 = vmatprep.subr.msk.mxu1 %vm161_vm0, %v159_v6  ;;  %v150_v15 = vld [vmem:[%s568_s4 + $0x28] sm:$0xff]  ;;  %v149_v16 = vld [vmem:[%s568_s4 + $0x20] sm:$0xff]  ;;  %v148_v17 = vld [vmem:[%s568_s4 + $0x18] sm:$0xff] }
   0x7   :  { %v147_v18 = vld [vmem:[%s568_s4 + $0x10] sm:$0xff]  ;;  %v146_v19 = vld [vmem:[%s568_s4 + $0x8] sm:$0xff]  ;;  %v309_v38 = vld [vmem:[%s565_s1] ss:$0 sm:$0xff]  ;;  %s419_s1 = smov [#allocation2]  }
   0x8   :  { %31 = vadd.xlane.f32.xlu1 %v28_v3  ;;  %v310_v40 = vld [vmem:[%s566_s2] ss:$0 sm:$0xff]  ;;  %s298_s2 = sshll.u32 %s419_s1, 4  ;;  %s299_s2 = int_to_ptr.vmem [resolvable:$true] %s298_s2 }
   0x9   :  { %358 = vmatpush3.xpose.msk.msra.mxu1 %vm161_vm0, %v159_v6  ;;  %v145_v48 = vld [vmem:[%s568_s4] sm:$0xff]  ;;  %s397_s6 = scalar_lea.vmem %s299_s2, 256  ;;  %p402_p1 = scmp.lt.s32.totalorder %s299_s2, %s299_s2 }
   0xa   :  { %359 = vmatprep.subr.msk.mxu1 %vm161_vm0, %v158_v7  ;;  %p398_p0 = scmp.ne.s32.totalorder %s299_s2, %s397_s6  ;;  %p403_p2 = scmp.lt.s32.totalorder %s397_s6, %s397_s6 }
   0xc   :  { %p404_p3 = por %p403_p2, %p402_p1 }
   0xd   :  { %360 = vmatpush3.xpose.msk.msra.mxu1 %vm161_vm0, %v158_v7 }
   0xe   :  { %361 = vmatprep.subr.msk.mxu1 %vm161_vm0, %v157_v8  ;;  %p405_p4 = pnand %p404_p3, %p398_p0 }
  0x11   :  { %362 = vmatpush3.xpose.msk.msra.mxu1 %vm161_vm0, %v157_v8 }
  0x12   :  { %363 = vmatprep.subr.msk.mxu1 %vm161_vm0, %v156_v9 }
  0x15   :  { %364 = vmatpush3.xpose.msk.msra.mxu1 %vm161_vm0, %v156_v9 }
  0x16   :  { %365 = vmatprep.subr.msk.mxu1 %vm161_vm0, %v155_v10 }
  0x19   :  { %366 = vmatpush3.xpose.msk.msra.mxu1 %vm161_vm0, %v155_v10 }
  0x1a   :  { %367 = vmatprep.subr.msk.mxu1 %vm161_vm0, %v154_v11 }
  0x1d   :  { %368 = vmatpush3.xpose.msk.msra.mxu1 %vm161_vm0, %v154_v11 }
  0x1e   :  { %369 = vmatprep.subr.msk.mxu1 %vm161_vm0, %v153_v12 }
  0x21   :  { %370 = vmatpush3.xpose.msk.msra.mxu1 %vm161_vm0, %v153_v12 }
  0x22   :  { %371 = vmatprep.subr.msk.mxu1 %vm161_vm0, %v152_v13 }
  0x25   :  { %372 = vmatpush3.xpose.msk.msra.mxu1 %vm161_vm0, %v152_v13 }
  0x26   :  { %373 = vmatprep.subr.msk.mxu1 %vm161_vm0, %v151_v14 }
  0x29   :  { %374 = vmatpush3.xpose.msk.msra.mxu1 %vm161_vm0, %v151_v14 }
  0x2a   :  { %375 = vmatprep.subr.msk.mxu1 %vm161_vm0, %v150_v15 }
  0x2d   :  { %376 = vmatpush3.xpose.msk.msra.mxu1 %vm161_vm0, %v150_v15 }
  0x2e   :  { %377 = vmatprep.subr.msk.mxu1 %vm161_vm0, %v149_v16 }
  0x31   :  { %378 = vmatpush3.xpose.msk.msra.mxu1 %vm161_vm0, %v149_v16 }
  0x32   :  { %379 = vmatprep.subr.msk.mxu1 %vm161_vm0, %v148_v17 }
  0x35   :  { %380 = vmatpush3.xpose.msk.msra.mxu1 %vm161_vm0, %v148_v17 }
  0x36   :  { %381 = vmatprep.subr.msk.mxu1 %vm161_vm0, %v147_v18 }
  0x39   :  { %382 = vmatpush3.xpose.msk.msra.mxu1 %vm161_vm0, %v147_v18 }
  0x3a   :  { %383 = vmatprep.subr.msk.mxu1 %vm161_vm0, %v146_v19 }
  0x3d   :  { %384 = vmatpush3.xpose.msk.msra.mxu1 %vm161_vm0, %v146_v19 }
  0x3e   :  { %385 = vmatprep.subr.msk.mxu1 %vm161_vm0, %v145_v48 }
  0x41   :  { %386 = vmatpush3.xpose.msk.msra.mxu1 %vm161_vm0, %v145_v48 }
  0x8b   :  { %v24_v20 = vpop.xlane.xlu0 %23 }
  0x8c   :  { %v33_v21 = vmul.f32 0.03125, %v24_v20 }
  0x8d   :  { %v30_v22 = vpop.xlane.xlu1 %29 }
  0x8e   :  { %v37_v23 = vmul.f32 %v33_v21, %v33_v21  ;;  %v35_v24 = vmul.f32 0.03125, %v30_v22  ;;  %v47_v36 = vsub.f32 %v455_v0, %v33_v21 }
  0x8f   :  { %v26_v25 = vpop.xlane.xlu0 %25 }
  0x90   :  { %v39_v26 = vsub.f32 %v35_v24, %v37_v23  ;;  %v34_v27 = vmul.f32 0.03125, %v26_v25 }
  0x91   :  { %v32_v28 = vpop.xlane.xlu1 %31 }
  0x92   :  { %v41_v29 = vmax.f32 %v39_v26, 0.0  ;;  %v38_v30 = vmul.f32 %v34_v27, %v34_v27  ;;  %v36_v31 = vmul.f32 0.03125, %v32_v28  ;;  %v48_v41 = vsub.f32 %v460_v1, %v34_v27 }
  0x94   :  { %v43_v32 = vadd.f32 1e-05, %v41_v29  ;;  %v40_v33 = vsub.f32 %v36_v31, %v38_v30 }
  0x96   :  { %393 = vrsqrt.f32 %v43_v32  ;;  %v42_v34 = vmax.f32 %v40_v33, 0.0 }
  0x98   :  { %v44_v35 = vadd.f32 1e-05, %v42_v34 }
  0x9a   :  { %395 = vrsqrt.f32 %v44_v35 }
  0xa3   :  { %v394_v37 = vpop.eup %393 }
  0xa4   :  { %v49_v39 = vmul.f32 %v394_v37, %v47_v36 }
  0xa6   :  { %v58_v42 = vmul.f32 %v309_v38, %v49_v39 }
  0xa7   :  { %v396_v43 = vpop.eup %395 }
  0xa8   :  { %v50_v44 = vmul.f32 %v396_v43, %v48_v41  ;;  %v67_v45 = vadd.f32 %v310_v40, %v58_v42 }
  0xaa   :  { %v59_v46 = vmul.f32 %v309_v38, %v50_v44  ;;  %352 = vmatprep.mubr.f32.mxu0 %v67_v45 }
  0xac   :  { %v68_v47 = vadd.f32 %v310_v40, %v59_v46 }
  0xae   :  { %353 = vmatmul.mubr.f32.vlgmr.msra.gmra.mxu0 %v68_v47 }
 0x16e   :  { %v354_v49 = vpop.f32.mrf.mxu0 }
 0x170   :  { %v136_v50 = vpop.f32.mrf.mxu0 }
 0x171   :  { %387 = vmatprep.mubr.msk.f32.mxu1 %vm161_vm0, %v136_v50 }
 0x172   :  { %388 = vmatmul.mubr.msk.f32.vlgmr.msra.gmra.mxu1 %vm161_vm0, %v354_v49 }
 0x232   :  { %v389_v51 = vpop.f32.mrf.mxu1 }
 0x233   :  { %292 = vst [vmem:[#allocation2 + $0x8] sm:$0xff] %v389_v51 }
 0x234   :  { %v282_v52 = vpop.f32.mrf.mxu1 }
 0x235   :  { %291 = vst [vmem:[#allocation2] sm:$0xff] %v282_v52 }
 0x236   :  { %408 = shalt.err (!%p405_p4)
}
 0x237   :  { %s420_s4 = smov 128   ;;  %s421_s7 = smov 8  }
 0x238   :  { %304 = dma.vmem_to_hbm [thread:$0]  %s299_s2, 256, %s569_s5, [#allocation3], %s420_s4, %s420_s4, %s421_s7  }
 0x239   :  { %417 = dma.done.wait [#allocation3], 256  }
 0x23a   :  { %418 = vsyncadd [#allocation3], 4294967040 }
 0x23b   :  { %308 = vsyncpa [#allocation3], 1 }

</bundles_post_ra>
